<compile_context>
chip_gen: v5e
topology: v5e:2x2
jax: 0.10.0
libtpu: 0.0.40
codegen_flags: <defaults>
</compile_context>

<pallas_src>
import jax
import jax.numpy as jnp
from jax import lax
from jax.experimental import pallas as pl
from jax.experimental.pallas import tpu as pltpu

DIMH = 128      # dim_mlp == lane width; real dim_h occupies the first lanes
TILE_N = 512    # node-row tile for preLinear
TILE_E = 512    # edges per grid step of the energy pass
ECHUNK = 8      # edges packed into one (8, 128) vreg per inner iteration


def _round_up(v, m):
    return ((v + m - 1) // m) * m


def _pick_vmem_limit():
    # v5e/v6e have 128 MiB physical VMEM, v7x has 64 MiB; size the scoped
    # limit per generation instead of hard-coding 32 MiB.
    try:
        cap = pltpu.get_tpu_info().vmem_capacity_bytes
    except Exception:
        cap = 64 * 1024 * 1024
    return int(min(cap * 0.8, 100 * 1024 * 1024))


_VMEM_LIMIT = _pick_vmem_limit()


# ---------------------------------------------------------------------------
# Kernel 1: preLinear + ReLU over node tiles (parallel grid, bf16 MXU operands,
# f32 accumulation, bf16 lane-dense output).
# ---------------------------------------------------------------------------
def _prelinear_kernel(x_ref, w_ref, b_ref, xh_ref):
    acc = jnp.dot(x_ref[...], w_ref[...], preferred_element_type=jnp.float32)
    xh_ref[...] = jnp.maximum(acc + b_ref[...], 0.0).astype(xh_ref.dtype)


# ---------------------------------------------------------------------------
# Kernel 2: Dirichlet energy over edge blocks ("parallel" grid, per-block
# partial outputs).  src/dst indices arrive via scalar prefetch (SMEM); xh is
# VMEM-resident (constant index_map) in bf16; 8 edges are staged per inner
# iteration into (8,128) f32 vregs so the diff^2 is whole-vreg VPU work.
# Padded edges have src == dst == 0 -> zero contribution.
# TODO(synk): for very large N/E, gather xh rows by DMA from HBM (pl.ANY) and
# single-buffer the resident block (pl.Buffered(1)) to relax v7x VMEM/SMEM.
# ---------------------------------------------------------------------------
def _make_energy_kernel(tile_e, dimh, chunk):
    n_chunks = tile_e // chunk

    def kernel(src_ref, dst_ref,                 # scalar prefetch (SMEM)
               xh_ref,                           # (N_pad, 1, DIMH) bf16, resident
               part_ref,                         # (chunk, DIMH) f32 per block
               sbuf_ref, dbuf_ref):              # (chunk, DIMH) f32 staging
        e0 = pl.program_id(0) * tile_e

        def chunk_body(c, acc):
            base = e0 + c * chunk
            for j in range(chunk):               # static unroll: independent gathers
                sbuf_ref[pl.ds(j, 1), :] = (
                    xh_ref[src_ref[base + j]].astype(jnp.float32))
                dbuf_ref[pl.ds(j, 1), :] = (
                    xh_ref[dst_ref[base + j]].astype(jnp.float32))
            diff = sbuf_ref[...] - dbuf_ref[...]          # one (8,128) vreg op
            return acc + diff * diff

        part_ref[...] = lax.fori_loop(
            0, n_chunks, chunk_body, jnp.zeros((chunk, dimh), jnp.float32))

    return kernel


# ---------------------------------------------------------------------------
# Kernel 3: MLP head on the gathered control-node features, run once.
# BatchNorm (eval mode) is pre-folded into w1/w2/w3a + biases in the wrapper.
# ---------------------------------------------------------------------------
def _head_kernel(h_ref, w1_ref, b1_ref, w2_ref, b2_ref, w3_ref, b3_ref,
                 w4_ref, b4_ref, out_ref):
    f32, bf16 = jnp.float32, jnp.bfloat16
    o = jnp.dot(h_ref[...], w1_ref[...], preferred_element_type=f32) + b1_ref[...]
    o = jnp.maximum(o, 0.0)
    o = jnp.dot(o.astype(bf16), w2_ref[...], preferred_element_type=f32) + b2_ref[...]
    o = jnp.maximum(o, 0.0)
    # final dropout = identity in eval mode
    o = jnp.dot(o.astype(bf16), w3_ref[...], preferred_element_type=f32) + b3_ref[...]
    o = jnp.maximum(o, 0.0)
    out_ref[...] = (jnp.dot(o.astype(bf16), w4_ref[...],
                            preferred_element_type=f32) + b4_ref[...])


# ---------------------------------------------------------------------------
# Wrapper
# ---------------------------------------------------------------------------
@jax.jit
def gnn_forward(params, x, edge_index, batch, ctrl):
    N, dim_in = x.shape
    E = edge_index.shape[1]
    B = ctrl.shape[0]
    dim_h = params["w_pre"].shape[1]
    dim_mlp = params["w1"].shape[1]
    assert dim_mlp == DIMH

    N_pad = _round_up(max(N, 1), TILE_N)
    E_pad = _round_up(max(E, 1), TILE_E)
    B_pad = _round_up(max(B, 1), 8)
    n_eblk = E_pad // TILE_E

    bf = jnp.bfloat16

    # fast_extract_control_nodes_features index math (stays on device).
    # Assumes graphs are contiguous & ordered in `batch` (standard PyG batching).
    counts = jnp.bincount(batch, length=B)
    before = jnp.cumsum(counts) - counts
    idx = (before + ctrl).astype(jnp.int32)

    src = edge_index[0].astype(jnp.int32)
    dst = edge_index[1].astype(jnp.int32)
    src_pad = jnp.zeros((E_pad,), jnp.int32).at[:E].set(src)
    dst_pad = jnp.zeros((E_pad,), jnp.int32).at[:E].set(dst)

    # Pad/cast x directly to bf16 (no intermediate f32 materialization).
    x_bf = jnp.zeros((N_pad, dim_in), bf).at[:N].set(x.astype(bf))

    # preLinear weights padded to DIMH lanes (zero lanes stay zero after ReLU).
    w_pre = jnp.zeros((dim_in, DIMH), jnp.float32).at[:, :dim_h].set(params["w_pre"])
    b_pre = jnp.zeros((1, DIMH), jnp.float32).at[0, :dim_h].set(params["b_pre"])

    # Eval-mode BatchNorm1d (same self.BN reused 3x) folded into lin1/2/3a.
    eps = 1e-5
    bn_scale = params["bn_gamma"] / jnp.sqrt(params["bn_var"] + eps)   # (DIMH,)
    bn_shift = params["bn_beta"] - params["bn_mean"] * bn_scale        # (DIMH,)

    def fold(w, b):
        return w * bn_scale[None, :], (b * bn_scale + bn_shift).reshape(1, DIMH)

    w1f, b1f = fold(params["w1"], params["b1"])        # (dim_h, DIMH)
    w2f, b2f = fold(params["w2"], params["b2"])        # (DIMH, DIMH)
    w3f, b3f = fold(params["w3a"], params["b3a"])      # (DIMH, DIMH)
    w1p = jnp.zeros((DIMH, DIMH), jnp.float32).at[:dim_h, :].set(w1f)
    w4p = jnp.zeros((DIMH, DIMH), jnp.float32).at[:, :1].set(params["w4a"])
    b4p = jnp.zeros((1, DIMH), jnp.float32).at[0, 0].set(params["b4a"][0])

    # --- kernel 1: preLinear, tiled over node rows, "parallel" grid ---------
    xh = pl.pallas_call(
        _prelinear_kernel,
        out_shape=jax.ShapeDtypeStruct((N_pad, DIMH), bf),
        grid=(N_pad // TILE_N,),
        in_specs=[
            pl.BlockSpec((TILE_N, dim_in), lambda i: (i, 0)),
            pl.BlockSpec((dim_in, DIMH), lambda i: (0, 0)),
            pl.BlockSpec((1, DIMH), lambda i: (0, 0)),
        ],
        out_specs=pl.BlockSpec((TILE_N, DIMH), lambda i: (i, 0)),
        compiler_params=pltpu.CompilerParams(
            dimension_semantics=("parallel",),
            vmem_limit_bytes=_VMEM_LIMIT),
        cost_estimate=pl.CostEstimate(
            flops=2 * N_pad * dim_in * DIMH,
            transcendentals=0,
            bytes_accessed=(N_pad * dim_in * 2 + dim_in * DIMH * 2
                            + N_pad * DIMH * 2)),
    )(x_bf, w_pre.astype(bf), b_pre)

    # View xh with a singleton sublane axis so the energy kernel can index rows
    # by a dynamic (scalar-prefetched) index on the untiled leading dimension.
    xh3 = xh.reshape(N_pad, 1, DIMH)

    # --- kernel 2: Dirichlet energy, parallel over edge blocks --------------
    # TODO(synk): dirichlet_energy() is not defined in the provided source;
    # implemented as sum over edges of ||x_src - x_dst||^2 on post-preLinear x.
    energy_kernel = _make_energy_kernel(TILE_E, DIMH, ECHUNK)
    e_parts = pl.pallas_call(
        energy_kernel,
        out_shape=jax.ShapeDtypeStruct((n_eblk * ECHUNK, DIMH), jnp.float32),
        grid_spec=pltpu.PrefetchScalarGridSpec(
            num_scalar_prefetch=2,
            grid=(n_eblk,),
            in_specs=[
                pl.BlockSpec((N_pad, 1, DIMH), lambda e, *_: (0, 0, 0)),  # xh resident
            ],
            out_specs=pl.BlockSpec((ECHUNK, DIMH), lambda e, *_: (e, 0)),
            scratch_shapes=[pltpu.VMEM((ECHUNK, DIMH), jnp.float32),
                            pltpu.VMEM((ECHUNK, DIMH), jnp.float32)],
        ),
        compiler_params=pltpu.CompilerParams(
            dimension_semantics=("parallel",),
            vmem_limit_bytes=_VMEM_LIMIT),
        cost_estimate=pl.CostEstimate(
            flops=3 * E_pad * DIMH,
            transcendentals=0,
            bytes_accessed=(N_pad * DIMH * 2 + E_pad * 2 * DIMH * 2
                            + n_eblk * ECHUNK * DIMH * 4)),
    )(src_pad, dst_pad, xh3)
    energy = jnp.sum(e_parts)

    # --- control-node gather (B tiny rows, plain XLA) + MLP head kernel -----
    h_bf = jnp.zeros((B_pad, DIMH), bf).at[:B].set(xh[idx])
    out_full = pl.pallas_call(
        _head_kernel,
        out_shape=jax.ShapeDtypeStruct((B_pad, DIMH), jnp.float32),
    )(h_bf, w1p.astype(bf), b1f, w2f.astype(bf), b2f,
      w3f.astype(bf), b3f, w4p.astype(bf), b4p)

    out = out_full[:B, 0:1]
    # torch forward returns (out, out, dirichlet_energy(x, edge_index).item())
    return out, out, energy


# ---------------------------------------------------------------------------
# Parameter init (matches torch Linear / BatchNorm1d shapes)
# ---------------------------------------------------------------------------
def init_params(key, dim_in, dim_h, dim_mlp):
    ks = jax.random.split(key, 14)

    def lin(kw, kb, fan_in, fan_out):
        bound = 1.0 / jnp.sqrt(fan_in)
        w = jax.random.uniform(kw, (fan_in, fan_out), jnp.float32, -bound, bound)
        b = jax.random.uniform(kb, (fan_out,), jnp.float32, -bound, bound)
        return w, b

    p = {}
    p["w_pre"], p["b_pre"] = lin(ks[0], ks[1], dim_in, dim_h)
    p["w1"], p["b1"] = lin(ks[2], ks[3], dim_h, dim_mlp)
    p["w2"], p["b2"] = lin(ks[4], ks[5], dim_mlp, dim_mlp)
    p["w3a"], p["b3a"] = lin(ks[6], ks[7], dim_mlp, dim_mlp)
    p["w4a"], p["b4a"] = lin(ks[8], ks[9], dim_mlp, 1)
    p["bn_gamma"] = 1.0 + 0.1 * jax.random.normal(ks[10], (dim_mlp,), jnp.float32)
    p["bn_beta"] = 0.1 * jax.random.normal(ks[11], (dim_mlp,), jnp.float32)
    p["bn_mean"] = 0.05 * jax.random.normal(ks[12], (dim_mlp,), jnp.float32)
    p["bn_var"] = 1.0 + 0.1 * jax.random.uniform(ks[13], (dim_mlp,), jnp.float32)
    return p


if __name__ == "__main__":
    key = jax.random.PRNGKey(0)
    dim_in, dim_h, dim_mlp = 8, 32, 128
    n_per_graph, num_graphs = 8, 2
    N = n_per_graph * num_graphs

    k_param, k_x = jax.random.split(key, 2)
    params = init_params(k_param, dim_in, dim_h, dim_mlp)

    x = jax.random.normal(k_x, (N, dim_in), jnp.float32)
    batch = jnp.repeat(jnp.arange(num_graphs, dtype=jnp.int32), n_per_graph)
    ctrl = jnp.array([0, 3], dtype=jnp.int32)          # control node per graph

    # simple ring graph inside each sub-graph
    base = jnp.arange(n_per_graph, dtype=jnp.int32)
    src = jnp.concatenate([base + g * n_per_graph for g in range(num_graphs)])
    dst = jnp.concatenate([(base + 1) % n_per_graph + g * n_per_graph
                           for g in range(num_graphs)])
    edge_index = jnp.stack([src, dst]).astype(jnp.int32)

    out1, out2, energy = gnn_forward(params, x, edge_index, batch, ctrl)
    jax.block_until_ready((out1, out2, energy))
    assert out1.shape == (num_graphs, 1) and out2.shape == (num_graphs, 1)
    assert bool(jnp.all(jnp.isfinite(out1))) and bool(jnp.isfinite(energy))
    print("KERNEL_OK")
</pallas_src>

<mosaic_0001>
module attributes {stable_mosaic.version = 11 : i64} {
  func.func @_prelinear_kernel(%arg0: i32, %arg1: memref<512x8xbf16, #tpu.memory_space<vmem>>, %arg2: memref<8x128xbf16, #tpu.memory_space<vmem>>, %arg3: memref<1x128xf32, #tpu.memory_space<vmem>>, %arg4: memref<512x128xbf16, #tpu.memory_space<vmem>>) attributes {dimension_semantics = [#tpu.dimension_semantics<parallel>], iteration_bounds = array<i64: 1>, scalar_prefetch = 0 : i64, scratch_operands = 0 : i64, tpu.core_type = #tpu.core_type<tc>, window_params = [{transform_indices = @transform_0, window_bounds = array<i64: 512, 8>}, {pipeline_mode = #tpu.pipeline_mode<synchronous>, transform_indices = @transform_1, window_bounds = array<i64: 8, 128>}, {pipeline_mode = #tpu.pipeline_mode<synchronous>, transform_indices = @transform_2, window_bounds = array<i64: 1, 128>}, {transform_indices = @transform_3, window_bounds = array<i64: 512, 128>}]} {
    %c0 = arith.constant 0 : index
    %c0_0 = arith.constant 0 : index
    %0 = vector.load %arg1[%c0, %c0_0] : memref<512x8xbf16, #tpu.memory_space<vmem>>, vector<512x8xbf16>
    %c0_1 = arith.constant 0 : index
    %c0_2 = arith.constant 0 : index
    %1 = vector.load %arg2[%c0_1, %c0_2] : memref<8x128xbf16, #tpu.memory_space<vmem>>, vector<8x128xbf16>
    %cst = arith.constant dense<0.000000e+00> : vector<512x128xf32>
    %2 = tpu.matmul %0, %1, %cst {dimension_numbers = #tpu.dot_dimension_numbers<[1], [0], [0], [1], [0, 0, 1, 1], [], []>} : vector<512x8xbf16>, vector<8x128xbf16>, vector<512x128xf32> -> vector<512x128xf32>
    %c0_3 = arith.constant 0 : index
    %c0_4 = arith.constant 0 : index
    %3 = vector.load %arg3[%c0_3, %c0_4] : memref<1x128xf32, #tpu.memory_space<vmem>>, vector<1x128xf32>
    %4 = vector.broadcast %3 : vector<1x128xf32> to vector<512x128xf32>
    %5 = arith.addf %2, %4 : vector<512x128xf32>
    %cst_5 = arith.constant 0.000000e+00 : f32
    %6 = vector.broadcast %cst_5 : f32 to vector<512x128xf32>
    %7 = arith.maximumf %5, %6 : vector<512x128xf32>
    %8 = arith.truncf %7 : vector<512x128xf32> to vector<512x128xbf16>
    %c0_6 = arith.constant 0 : index
    %c0_7 = arith.constant 0 : index
    %9 = vector.load %arg4[%c0_6, %c0_7] : memref<512x128xbf16, #tpu.memory_space<vmem>>, vector<512x128xbf16>
    tpu.vector_store %arg4[%c0_6, %c0_7], %8 {strides = array<i32>} : memref<512x128xbf16, #tpu.memory_space<vmem>>, vector<512x128xbf16>,
    return
  }
  func.func @transform_0(%arg0: i32) -> (i32, i32) {
    %c0_i32 = arith.constant 0 : i32
    %c0_i32_0 = arith.constant 0 : i32
    return %arg0, %c0_i32 : i32, i32
  }
  func.func @transform_1(%arg0: i32) -> (i32, i32) {
    %c0_i32 = arith.constant 0 : i32
    %c0_i32_0 = arith.constant 0 : i32
    %c0_i32_1 = arith.constant 0 : i32
    return %c0_i32, %c0_i32_0 : i32, i32
  }
  func.func @transform_2(%arg0: i32) -> (i32, i32) {
    %c0_i32 = arith.constant 0 : i32
    %c0_i32_0 = arith.constant 0 : i32
    %c0_i32_1 = arith.constant 0 : i32
    return %c0_i32, %c0_i32_0 : i32, i32
  }
  func.func @transform_3(%arg0: i32) -> (i32, i32) {
    %c0_i32 = arith.constant 0 : i32
    %c0_i32_0 = arith.constant 0 : i32
    return %arg0, %c0_i32 : i32, i32
  }
}

module attributes {stable_mosaic.version = 11 : i64} {
  func.func @_head_kernel(%arg0: memref<8x128xbf16, #tpu.memory_space<vmem>>, %arg1: memref<128x128xbf16, #tpu.memory_space<vmem>>, %arg2: memref<1x128xf32, #tpu.memory_space<vmem>>, %arg3: memref<128x128xbf16, #tpu.memory_space<vmem>>, %arg4: memref<1x128xf32, #tpu.memory_space<vmem>>, %arg5: memref<128x128xbf16, #tpu.memory_space<vmem>>, %arg6: memref<1x128xf32, #tpu.memory_space<vmem>>, %arg7: memref<128x128xbf16, #tpu.memory_space<vmem>>, %arg8: memref<1x128xf32, #tpu.memory_space<vmem>>, %arg9: memref<8x128xf32, #tpu.memory_space<vmem>>) attributes {dimension_semantics = [], scalar_prefetch = 0 : i64, scratch_operands = 0 : i64, tpu.core_type = #tpu.core_type<tc>} {
    %c0 = arith.constant 0 : index
    %c0_0 = arith.constant 0 : index
    %0 = vector.load %arg0[%c0, %c0_0] : memref<8x128xbf16, #tpu.memory_space<vmem>>, vector<8x128xbf16>
    %c0_1 = arith.constant 0 : index
    %c0_2 = arith.constant 0 : index
    %1 = vector.load %arg1[%c0_1, %c0_2] : memref<128x128xbf16, #tpu.memory_space<vmem>>, vector<128x128xbf16>
    %cst = arith.constant dense<0.000000e+00> : vector<8x128xf32>
    %2 = tpu.matmul %0, %1, %cst {dimension_numbers = #tpu.dot_dimension_numbers<[1], [0], [0], [1], [0, 0, 1, 1], [], []>} : vector<8x128xbf16>, vector<128x128xbf16>, vector<8x128xf32> -> vector<8x128xf32>
    %c0_3 = arith.constant 0 : index
    %c0_4 = arith.constant 0 : index
    %3 = vector.load %arg2[%c0_3, %c0_4] : memref<1x128xf32, #tpu.memory_space<vmem>>, vector<1x128xf32>
    %4 = vector.broadcast %3 : vector<1x128xf32> to vector<8x128xf32>
    %5 = arith.addf %2, %4 : vector<8x128xf32>
    %cst_5 = arith.constant 0.000000e+00 : f32
    %6 = vector.broadcast %cst_5 : f32 to vector<8x128xf32>
    %7 = arith.maximumf %5, %6 : vector<8x128xf32>
    %8 = arith.truncf %7 : vector<8x128xf32> to vector<8x128xbf16>
    %c0_6 = arith.constant 0 : index
    %c0_7 = arith.constant 0 : index
    %9 = vector.load %arg3[%c0_6, %c0_7] : memref<128x128xbf16, #tpu.memory_space<vmem>>, vector<128x128xbf16>
    %cst_8 = arith.constant dense<0.000000e+00> : vector<8x128xf32>
    %10 = tpu.matmul %8, %9, %cst_8 {dimension_numbers = #tpu.dot_dimension_numbers<[1], [0], [0], [1], [0, 0, 1, 1], [], []>} : vector<8x128xbf16>, vector<128x128xbf16>, vector<8x128xf32> -> vector<8x128xf32>
    %c0_9 = arith.constant 0 : index
    %c0_10 = arith.constant 0 : index
    %11 = vector.load %arg4[%c0_9, %c0_10] : memref<1x128xf32, #tpu.memory_space<vmem>>, vector<1x128xf32>
    %12 = vector.broadcast %11 : vector<1x128xf32> to vector<8x128xf32>
    %13 = arith.addf %10, %12 : vector<8x128xf32>
    %cst_11 = arith.constant 0.000000e+00 : f32
    %14 = vector.broadcast %cst_11 : f32 to vector<8x128xf32>
    %15 = arith.maximumf %13, %14 : vector<8x128xf32>
    %16 = arith.truncf %15 : vector<8x128xf32> to vector<8x128xbf16>
    %c0_12 = arith.constant 0 : index
    %c0_13 = arith.constant 0 : index
    %17 = vector.load %arg5[%c0_12, %c0_13] : memref<128x128xbf16, #tpu.memory_space<vmem>>, vector<128x128xbf16>
    %cst_14 = arith.constant dense<0.000000e+00> : vector<8x128xf32>
    %18 = tpu.matmul %16, %17, %cst_14 {dimension_numbers = #tpu.dot_dimension_numbers<[1], [0], [0], [1], [0, 0, 1, 1], [], []>} : vector<8x128xbf16>, vector<128x128xbf16>, vector<8x128xf32> -> vector<8x128xf32>
    %c0_15 = arith.constant 0 : index
    %c0_16 = arith.constant 0 : index
    %19 = vector.load %arg6[%c0_15, %c0_16] : memref<1x128xf32, #tpu.memory_space<vmem>>, vector<1x128xf32>
    %20 = vector.broadcast %19 : vector<1x128xf32> to vector<8x128xf32>
    %21 = arith.addf %18, %20 : vector<8x128xf32>
    %cst_17 = arith.constant 0.000000e+00 : f32
    %22 = vector.broadcast %cst_17 : f32 to vector<8x128xf32>
    %23 = arith.maximumf %21, %22 : vector<8x128xf32>
    %24 = arith.truncf %23 : vector<8x128xf32> to vector<8x128xbf16>
    %c0_18 = arith.constant 0 : index
    %c0_19 = arith.constant 0 : index
    %25 = vector.load %arg7[%c0_18, %c0_19] : memref<128x128xbf16, #tpu.memory_space<vmem>>, vector<128x128xbf16>
    %cst_20 = arith.constant dense<0.000000e+00> : vector<8x128xf32>
    %26 = tpu.matmul %24, %25, %cst_20 {dimension_numbers = #tpu.dot_dimension_numbers<[1], [0], [0], [1], [0, 0, 1, 1], [], []>} : vector<8x128xbf16>, vector<128x128xbf16>, vector<8x128xf32> -> vector<8x128xf32>
    %c0_21 = arith.constant 0 : index
    %c0_22 = arith.constant 0 : index
    %27 = vector.load %arg8[%c0_21, %c0_22] : memref<1x128xf32, #tpu.memory_space<vmem>>, vector<1x128xf32>
    %28 = vector.broadcast %27 : vector<1x128xf32> to vector<8x128xf32>
    %29 = arith.addf %26, %28 : vector<8x128xf32>
    %c0_23 = arith.constant 0 : index
    %c0_24 = arith.constant 0 : index
    %30 = vector.load %arg9[%c0_23, %c0_24] : memref<8x128xf32, #tpu.memory_space<vmem>>, vector<8x128xf32>
    tpu.vector_store %arg9[%c0_23, %c0_24], %29 {strides = array<i32>} : memref<8x128xf32, #tpu.memory_space<vmem>>, vector<8x128xf32>,
    return
  }
}

module attributes {stable_mosaic.version = 11 : i64} {
  func.func @kernel(%arg0: i32, %arg1: memref<512xi32, #tpu.memory_space<smem>>, %arg2: memref<512xi32, #tpu.memory_space<smem>>, %arg3: memref<512x1x128xbf16, #tpu.memory_space<vmem>>, %arg4: memref<8x128xf32, #tpu.memory_space<vmem>>, %arg5: memref<8x128xf32, #tpu.memory_space<vmem>>, %arg6: memref<8x128xf32, #tpu.memory_space<vmem>>) attributes {dimension_semantics = [#tpu.dimension_semantics<parallel>], iteration_bounds = array<i64: 1>, scalar_prefetch = 2 : i64, scratch_operands = 2 : i64, tpu.core_type = #tpu.core_type<tc>, window_params = [{pipeline_mode = #tpu.pipeline_mode<synchronous>, transform_indices = @transform_0, window_bounds = array<i64: 512, 1, 128>}, {transform_indices = @transform_1, window_bounds = array<i64: 8, 128>}]} {
    %c512_i32 = arith.constant 512 : i32
    %0 = arith.muli %arg0, %c512_i32 : i32
    %cst = arith.constant 0.000000e+00 : f32
    %1 = vector.broadcast %cst : f32 to vector<8x128xf32>
    %c0_i32 = arith.constant 0 : i32
    %c64_i32 = arith.constant 64 : i32
    %2 = arith.addi %c0_i32, %c64_i32 : i32
    %c1_i32 = arith.constant 1 : i32
    %3 = scf.for %arg7 = %c0_i32 to %2 step %c1_i32 iter_args(%arg8 = %1) -> (vector<8x128xf32>)  : i32 {
      %c8_i32 = arith.constant 8 : i32
      %5 = arith.muli %arg7, %c8_i32 : i32
      %6 = arith.addi %0, %5 : i32
      %c0_i32_2 = arith.constant 0 : i32
      %7 = arith.addi %6, %c0_i32_2 : i32
      %8 = arith.index_cast %7 : i32 to index
      %9 = memref.load %arg1[%8] : memref<512xi32, #tpu.memory_space<smem>>
      %10 = arith.index_cast %9 : i32 to index
      %c0_3 = arith.constant 0 : index
      %c0_4 = arith.constant 0 : index
      %11 = vector.load %arg3[%10, %c0_3, %c0_4] : memref<512x1x128xbf16, #tpu.memory_space<vmem>>, vector<1x1x128xbf16>
      %12 = vector.shape_cast %11 : vector<1x1x128xbf16> to vector<1x128xbf16>
      %13 = arith.extf %12 : vector<1x128xbf16> to vector<1x128xf32>
      %c0_5 = arith.constant 0 : index
      %c0_6 = arith.constant 0 : index
      %14 = vector.load %arg5[%c0_5, %c0_6] : memref<8x128xf32, #tpu.memory_space<vmem>>, vector<1x128xf32>
      tpu.vector_store %arg5[%c0_5, %c0_6], %13 {strides = array<i32>} : memref<8x128xf32, #tpu.memory_space<vmem>>, vector<1x128xf32>,
      %c0_i32_7 = arith.constant 0 : i32
      %15 = arith.addi %6, %c0_i32_7 : i32
      %16 = arith.index_cast %15 : i32 to index
      %17 = memref.load %arg2[%16] : memref<512xi32, #tpu.memory_space<smem>>
      %18 = arith.index_cast %17 : i32 to index
      %c0_8 = arith.constant 0 : index
      %c0_9 = arith.constant 0 : index
      %19 = vector.load %arg3[%18, %c0_8, %c0_9] : memref<512x1x128xbf16, #tpu.memory_space<vmem>>, vector<1x1x128xbf16>
      %20 = vector.shape_cast %19 : vector<1x1x128xbf16> to vector<1x128xbf16>
      %21 = arith.extf %20 : vector<1x128xbf16> to vector<1x128xf32>
      %c0_10 = arith.constant 0 : index
      %c0_11 = arith.constant 0 : index
      %22 = vector.load %arg6[%c0_10, %c0_11] : memref<8x128xf32, #tpu.memory_space<vmem>>, vector<1x128xf32>
      tpu.vector_store %arg6[%c0_10, %c0_11], %21 {strides = array<i32>} : memref<8x128xf32, #tpu.memory_space<vmem>>, vector<1x128xf32>,
      %c1_i32_12 = arith.constant 1 : i32
      %23 = arith.addi %6, %c1_i32_12 : i32
      %24 = arith.index_cast %23 : i32 to index
      %25 = memref.load %arg1[%24] : memref<512xi32, #tpu.memory_space<smem>>
      %26 = arith.index_cast %25 : i32 to index
      %c0_13 = arith.constant 0 : index
      %c0_14 = arith.constant 0 : index
      %27 = vector.load %arg3[%26, %c0_13, %c0_14] : memref<512x1x128xbf16, #tpu.memory_space<vmem>>, vector<1x1x128xbf16>
      %28 = vector.shape_cast %27 : vector<1x1x128xbf16> to vector<1x128xbf16>
      %29 = arith.extf %28 : vector<1x128xbf16> to vector<1x128xf32>
      %c1 = arith.constant 1 : index
      %c0_15 = arith.constant 0 : index
      %30 = vector.load %arg5[%c1, %c0_15] : memref<8x128xf32, #tpu.memory_space<vmem>>, vector<1x128xf32>
      tpu.vector_store %arg5[%c1, %c0_15], %29 {strides = array<i32>} : memref<8x128xf32, #tpu.memory_space<vmem>>, vector<1x128xf32>,
      %c1_i32_16 = arith.constant 1 : i32
      %31 = arith.addi %6, %c1_i32_16 : i32
      %32 = arith.index_cast %31 : i32 to index
      %33 = memref.load %arg2[%32] : memref<512xi32, #tpu.memory_space<smem>>
      %34 = arith.index_cast %33 : i32 to index
      %c0_17 = arith.constant 0 : index
      %c0_18 = arith.constant 0 : index
      %35 = vector.load %arg3[%34, %c0_17, %c0_18] : memref<512x1x128xbf16, #tpu.memory_space<vmem>>, vector<1x1x128xbf16>
      %36 = vector.shape_cast %35 : vector<1x1x128xbf16> to vector<1x128xbf16>
      %37 = arith.extf %36 : vector<1x128xbf16> to vector<1x128xf32>
      %c1_19 = arith.constant 1 : index
      %c0_20 = arith.constant 0 : index
      %38 = vector.load %arg6[%c1_19, %c0_20] : memref<8x128xf32, #tpu.memory_space<vmem>>, vector<1x128xf32>
      tpu.vector_store %arg6[%c1_19, %c0_20], %37 {strides = array<i32>} : memref<8x128xf32, #tpu.memory_space<vmem>>, vector<1x128xf32>,
      %c2_i32 = arith.constant 2 : i32
      %39 = arith.addi %6, %c2_i32 : i32
      %40 = arith.index_cast %39 : i32 to index
      %41 = memref.load %arg1[%40] : memref<512xi32, #tpu.memory_space<smem>>
      %42 = arith.index_cast %41 : i32 to index
      %c0_21 = arith.constant 0 : index
      %c0_22 = arith.constant 0 : index
      %43 = vector.load %arg3[%42, %c0_21, %c0_22] : memref<512x1x128xbf16, #tpu.memory_space<vmem>>, vector<1x1x128xbf16>
      %44 = vector.shape_cast %43 : vector<1x1x128xbf16> to vector<1x128xbf16>
      %45 = arith.extf %44 : vector<1x128xbf16> to vector<1x128xf32>
      %c2 = arith.constant 2 : index
      %c0_23 = arith.constant 0 : index
      %46 = vector.load %arg5[%c2, %c0_23] : memref<8x128xf32, #tpu.memory_space<vmem>>, vector<1x128xf32>
      tpu.vector_store %arg5[%c2, %c0_23], %45 {strides = array<i32>} : memref<8x128xf32, #tpu.memory_space<vmem>>, vector<1x128xf32>,
      %c2_i32_24 = arith.constant 2 : i32
      %47 = arith.addi %6, %c2_i32_24 : i32
      %48 = arith.index_cast %47 : i32 to index
      %49 = memref.load %arg2[%48] : memref<512xi32, #tpu.memory_space<smem>>
      %50 = arith.index_cast %49 : i32 to index
      %c0_25 = arith.constant 0 : index
      %c0_26 = arith.constant 0 : index
      %51 = vector.load %arg3[%50, %c0_25, %c0_26] : memref<512x1x128xbf16, #tpu.memory_space<vmem>>, vector<1x1x128xbf16>
      %52 = vector.shape_cast %51 : vector<1x1x128xbf16> to vector<1x128xbf16>
      %53 = arith.extf %52 : vector<1x128xbf16> to vector<1x128xf32>
      %c2_27 = arith.constant 2 : index
      %c0_28 = arith.constant 0 : index
      %54 = vector.load %arg6[%c2_27, %c0_28] : memref<8x128xf32, #tpu.memory_space<vmem>>, vector<1x128xf32>
      tpu.vector_store %arg6[%c2_27, %c0_28], %53 {strides = array<i32>} : memref<8x128xf32, #tpu.memory_space<vmem>>, vector<1x128xf32>,
      %c3_i32 = arith.constant 3 : i32
      %55 = arith.addi %6, %c3_i32 : i32
      %56 = arith.index_cast %55 : i32 to index
      %57 = memref.load %arg1[%56] : memref<512xi32, #tpu.memory_space<smem>>
      %58 = arith.index_cast %57 : i32 to index
      %c0_29 = arith.constant 0 : index
      %c0_30 = arith.constant 0 : index
      %59 = vector.load %arg3[%58, %c0_29, %c0_30] : memref<512x1x128xbf16, #tpu.memory_space<vmem>>, vector<1x1x128xbf16>
      %60 = vector.shape_cast %59 : vector<1x1x128xbf16> to vector<1x128xbf16>
      %61 = arith.extf %60 : vector<1x128xbf16> to vector<1x128xf32>
      %c3 = arith.constant 3 : index
      %c0_31 = arith.constant 0 : index
      %62 = vector.load %arg5[%c3, %c0_31] : memref<8x128xf32, #tpu.memory_space<vmem>>, vector<1x128xf32>
      tpu.vector_store %arg5[%c3, %c0_31], %61 {strides = array<i32>} : memref<8x128xf32, #tpu.memory_space<vmem>>, vector<1x128xf32>,
      %c3_i32_32 = arith.constant 3 : i32
      %63 = arith.addi %6, %c3_i32_32 : i32
      %64 = arith.index_cast %63 : i32 to index
      %65 = memref.load %arg2[%64] : memref<512xi32, #tpu.memory_space<smem>>
      %66 = arith.index_cast %65 : i32 to index
      %c0_33 = arith.constant 0 : index
      %c0_34 = arith.constant 0 : index
      %67 = vector.load %arg3[%66, %c0_33, %c0_34] : memref<512x1x128xbf16, #tpu.memory_space<vmem>>, vector<1x1x128xbf16>
      %68 = vector.shape_cast %67 : vector<1x1x128xbf16> to vector<1x128xbf16>
      %69 = arith.extf %68 : vector<1x128xbf16> to vector<1x128xf32>
      %c3_35 = arith.constant 3 : index
      %c0_36 = arith.constant 0 : index
      %70 = vector.load %arg6[%c3_35, %c0_36] : memref<8x128xf32, #tpu.memory_space<vmem>>, vector<1x128xf32>
      tpu.vector_store %arg6[%c3_35, %c0_36], %69 {strides = array<i32>} : memref<8x128xf32, #tpu.memory_space<vmem>>, vector<1x128xf32>,
      %c4_i32 = arith.constant 4 : i32
      %71 = arith.addi %6, %c4_i32 : i32
      %72 = arith.index_cast %71 : i32 to index
      %73 = memref.load %arg1[%72] : memref<512xi32, #tpu.memory_space<smem>>
      %74 = arith.index_cast %73 : i32 to index
      %c0_37 = arith.constant 0 : index
      %c0_38 = arith.constant 0 : index
      %75 = vector.load %arg3[%74, %c0_37, %c0_38] : memref<512x1x128xbf16, #tpu.memory_space<vmem>>, vector<1x1x128xbf16>
      %76 = vector.shape_cast %75 : vector<1x1x128xbf16> to vector<1x128xbf16>
      %77 = arith.extf %76 : vector<1x128xbf16> to vector<1x128xf32>
      %c4 = arith.constant 4 : index
      %c0_39 = arith.constant 0 : index
      %78 = vector.load %arg5[%c4, %c0_39] : memref<8x128xf32, #tpu.memory_space<vmem>>, vector<1x128xf32>
      tpu.vector_store %arg5[%c4, %c0_39], %77 {strides = array<i32>} : memref<8x128xf32, #tpu.memory_space<vmem>>, vector<1x128xf32>,
      %c4_i32_40 = arith.constant 4 : i32
      %79 = arith.addi %6, %c4_i32_40 : i32
      %80 = arith.index_cast %79 : i32 to index
      %81 = memref.load %arg2[%80] : memref<512xi32, #tpu.memory_space<smem>>
      %82 = arith.index_cast %81 : i32 to index
      %c0_41 = arith.constant 0 : index
      %c0_42 = arith.constant 0 : index
      %83 = vector.load %arg3[%82, %c0_41, %c0_42] : memref<512x1x128xbf16, #tpu.memory_space<vmem>>, vector<1x1x128xbf16>
      %84 = vector.shape_cast %83 : vector<1x1x128xbf16> to vector<1x128xbf16>
      %85 = arith.extf %84 : vector<1x128xbf16> to vector<1x128xf32>
      %c4_43 = arith.constant 4 : index
      %c0_44 = arith.constant 0 : index
      %86 = vector.load %arg6[%c4_43, %c0_44] : memref<8x128xf32, #tpu.memory_space<vmem>>, vector<1x128xf32>
      tpu.vector_store %arg6[%c4_43, %c0_44], %85 {strides = array<i32>} : memref<8x128xf32, #tpu.memory_space<vmem>>, vector<1x128xf32>,
      %c5_i32 = arith.constant 5 : i32
      %87 = arith.addi %6, %c5_i32 : i32
      %88 = arith.index_cast %87 : i32 to index
      %89 = memref.load %arg1[%88] : memref<512xi32, #tpu.memory_space<smem>>
      %90 = arith.index_cast %89 : i32 to index
      %c0_45 = arith.constant 0 : index
      %c0_46 = arith.constant 0 : index
      %91 = vector.load %arg3[%90, %c0_45, %c0_46] : memref<512x1x128xbf16, #tpu.memory_space<vmem>>, vector<1x1x128xbf16>
      %92 = vector.shape_cast %91 : vector<1x1x128xbf16> to vector<1x128xbf16>
      %93 = arith.extf %92 : vector<1x128xbf16> to vector<1x128xf32>
      %c5 = arith.constant 5 : index
      %c0_47 = arith.constant 0 : index
      %94 = vector.load %arg5[%c5, %c0_47] : memref<8x128xf32, #tpu.memory_space<vmem>>, vector<1x128xf32>
      tpu.vector_store %arg5[%c5, %c0_47], %93 {strides = array<i32>} : memref<8x128xf32, #tpu.memory_space<vmem>>, vector<1x128xf32>,
      %c5_i32_48 = arith.constant 5 : i32
      %95 = arith.addi %6, %c5_i32_48 : i32
      %96 = arith.index_cast %95 : i32 to index
      %97 = memref.load %arg2[%96] : memref<512xi32, #tpu.memory_space<smem>>
      %98 = arith.index_cast %97 : i32 to index
      %c0_49 = arith.constant 0 : index
      %c0_50 = arith.constant 0 : index
      %99 = vector.load %arg3[%98, %c0_49, %c0_50] : memref<512x1x128xbf16, #tpu.memory_space<vmem>>, vector<1x1x128xbf16>
      %100 = vector.shape_cast %99 : vector<1x1x128xbf16> to vector<1x128xbf16>
      %101 = arith.extf %100 : vector<1x128xbf16> to vector<1x128xf32>
      %c5_51 = arith.constant 5 : index
      %c0_52 = arith.constant 0 : index
      %102 = vector.load %arg6[%c5_51, %c0_52] : memref<8x128xf32, #tpu.memory_space<vmem>>, vector<1x128xf32>
      tpu.vector_store %arg6[%c5_51, %c0_52], %101 {strides = array<i32>} : memref<8x128xf32, #tpu.memory_space<vmem>>, vector<1x128xf32>,
      %c6_i32 = arith.constant 6 : i32
      %103 = arith.addi %6, %c6_i32 : i32
      %104 = arith.index_cast %103 : i32 to index
      %105 = memref.load %arg1[%104] : memref<512xi32, #tpu.memory_space<smem>>
      %106 = arith.index_cast %105 : i32 to index
      %c0_53 = arith.constant 0 : index
      %c0_54 = arith.constant 0 : index
      %107 = vector.load %arg3[%106, %c0_53, %c0_54] : memref<512x1x128xbf16, #tpu.memory_space<vmem>>, vector<1x1x128xbf16>
      %108 = vector.shape_cast %107 : vector<1x1x128xbf16> to vector<1x128xbf16>
      %109 = arith.extf %108 : vector<1x128xbf16> to vector<1x128xf32>
      %c6 = arith.constant 6 : index
      %c0_55 = arith.constant 0 : index
      %110 = vector.load %arg5[%c6, %c0_55] : memref<8x128xf32, #tpu.memory_space<vmem>>, vector<1x128xf32>
      tpu.vector_store %arg5[%c6, %c0_55], %109 {strides = array<i32>} : memref<8x128xf32, #tpu.memory_space<vmem>>, vector<1x128xf32>,
      %c6_i32_56 = arith.constant 6 : i32
      %111 = arith.addi %6, %c6_i32_56 : i32
      %112 = arith.index_cast %111 : i32 to index
      %113 = memref.load %arg2[%112] : memref<512xi32, #tpu.memory_space<smem>>
      %114 = arith.index_cast %113 : i32 to index
      %c0_57 = arith.constant 0 : index
      %c0_58 = arith.constant 0 : index
      %115 = vector.load %arg3[%114, %c0_57, %c0_58] : memref<512x1x128xbf16, #tpu.memory_space<vmem>>, vector<1x1x128xbf16>
      %116 = vector.shape_cast %115 : vector<1x1x128xbf16> to vector<1x128xbf16>
      %117 = arith.extf %116 : vector<1x128xbf16> to vector<1x128xf32>
      %c6_59 = arith.constant 6 : index
      %c0_60 = arith.constant 0 : index
      %118 = vector.load %arg6[%c6_59, %c0_60] : memref<8x128xf32, #tpu.memory_space<vmem>>, vector<1x128xf32>
      tpu.vector_store %arg6[%c6_59, %c0_60], %117 {strides = array<i32>} : memref<8x128xf32, #tpu.memory_space<vmem>>, vector<1x128xf32>,
      %c7_i32 = arith.constant 7 : i32
      %119 = arith.addi %6, %c7_i32 : i32
      %120 = arith.index_cast %119 : i32 to index
      %121 = memref.load %arg1[%120] : memref<512xi32, #tpu.memory_space<smem>>
      %122 = arith.index_cast %121 : i32 to index
      %c0_61 = arith.constant 0 : index
      %c0_62 = arith.constant 0 : index
      %123 = vector.load %arg3[%122, %c0_61, %c0_62] : memref<512x1x128xbf16, #tpu.memory_space<vmem>>, vector<1x1x128xbf16>
      %124 = vector.shape_cast %123 : vector<1x1x128xbf16> to vector<1x128xbf16>
      %125 = arith.extf %124 : vector<1x128xbf16> to vector<1x128xf32>
      %c7 = arith.constant 7 : index
      %c0_63 = arith.constant 0 : index
      %126 = vector.load %arg5[%c7, %c0_63] : memref<8x128xf32, #tpu.memory_space<vmem>>, vector<1x128xf32>
      tpu.vector_store %arg5[%c7, %c0_63], %125 {strides = array<i32>} : memref<8x128xf32, #tpu.memory_space<vmem>>, vector<1x128xf32>,
      %c7_i32_64 = arith.constant 7 : i32
      %127 = arith.addi %6, %c7_i32_64 : i32
      %128 = arith.index_cast %127 : i32 to index
      %129 = memref.load %arg2[%128] : memref<512xi32, #tpu.memory_space<smem>>
      %130 = arith.index_cast %129 : i32 to index
      %c0_65 = arith.constant 0 : index
      %c0_66 = arith.constant 0 : index
      %131 = vector.load %arg3[%130, %c0_65, %c0_66] : memref<512x1x128xbf16, #tpu.memory_space<vmem>>, vector<1x1x128xbf16>
      %132 = vector.shape_cast %131 : vector<1x1x128xbf16> to vector<1x128xbf16>
      %133 = arith.extf %132 : vector<1x128xbf16> to vector<1x128xf32>
      %c7_67 = arith.constant 7 : index
      %c0_68 = arith.constant 0 : index
      %134 = vector.load %arg6[%c7_67, %c0_68] : memref<8x128xf32, #tpu.memory_space<vmem>>, vector<1x128xf32>
      tpu.vector_store %arg6[%c7_67, %c0_68], %133 {strides = array<i32>} : memref<8x128xf32, #tpu.memory_space<vmem>>, vector<1x128xf32>,
      %c0_69 = arith.constant 0 : index
      %c0_70 = arith.constant 0 : index
      %135 = vector.load %arg5[%c0_69, %c0_70] : memref<8x128xf32, #tpu.memory_space<vmem>>, vector<8x128xf32>
      %c0_71 = arith.constant 0 : index
      %c0_72 = arith.constant 0 : index
      %136 = vector.load %arg6[%c0_71, %c0_72] : memref<8x128xf32, #tpu.memory_space<vmem>>, vector<8x128xf32>
      %137 = arith.subf %135, %136 : vector<8x128xf32>
      %138 = arith.mulf %137, %137 : vector<8x128xf32>
      %139 = arith.addf %arg8, %138 : vector<8x128xf32>
      scf.yield %139 : vector<8x128xf32>
    }
    %c64_i32_0 = arith.constant 64 : i32
    %c0 = arith.constant 0 : index
    %c0_1 = arith.constant 0 : index
    %4 = vector.load %arg4[%c0, %c0_1] : memref<8x128xf32, #tpu.memory_space<vmem>>, vector<8x128xf32>
    tpu.vector_store %arg4[%c0, %c0_1], %3 {strides = array<i32>} : memref<8x128xf32, #tpu.memory_space<vmem>>, vector<8x128xf32>,
    return
  }
  func.func @transform_0(%arg0: i32, %arg1: memref<512xi32, #tpu.memory_space<smem>>, %arg2: memref<512xi32, #tpu.memory_space<smem>>) -> (i32, i32, i32) {
    %c0_i32 = arith.constant 0 : i32
    %c0_i32_0 = arith.constant 0 : i32
    %c0_i32_1 = arith.constant 0 : i32
    %c0_i32_2 = arith.constant 0 : i32
    return %c0_i32, %c0_i32_0, %c0_i32_1 : i32, i32, i32
  }
  func.func @transform_1(%arg0: i32, %arg1: memref<512xi32, #tpu.memory_space<smem>>, %arg2: memref<512xi32, #tpu.memory_space<smem>>) -> (i32, i32) {
    %c0_i32 = arith.constant 0 : i32
    %c0_i32_0 = arith.constant 0 : i32
    return %arg0, %c0_i32 : i32, i32
  }
}

</mosaic_0001>

<bundles_post_ra>
// kernel: gnn_forward.4
= control target key start
LH: loop header
LB: loop body
LE: loop exit
PB: predicated region body
PF: predicated region fallthrough
CT: control target
= control target key end

     0   :  { %s215_s18 = smov [#allocation5]   ;;  %s216_s19 = smov [#allocation6]   ;;  %s350_s0 = inlined_call_operand.vmem [shape: s32[512], index: 0, kind: input, shape index: {}]   ;;  %s351_s2 = inlined_call_operand.vmem [shape: bf16[512,1,128], index: 2, kind: input, shape index: {}]   ;;  %s352_s3 = inlined_call_operand.vmem [shape: f32[8,128], index: 3, kind: output, shape index: {}]   ;;  %s353_s1 = inlined_call_operand.vmem [shape: s32[512], index: 1, kind: input, shape index: {}]  }
   0x1   :  { %s9_s14 = sshll.u32 %s350_s0, 4  ;;  %s14_s17 = sshll.u32 %s353_s1, 4  ;;  %s10_s14 = int_to_ptr.vmem [resolvable:$true] %s9_s14  ;;  %s15_s17 = int_to_ptr.vmem [resolvable:$true] %s14_s17 }
   0x2   :  { %12 = dma.vmem_to_smem %s10_s14, 64, %s215_s18, [#allocation4] }
   0x3   :  { %17 = dma.vmem_to_smem %s15_s17, 64, %s216_s19, [#allocation4] }
   0x4   :  { %205 = dma.done.wait [#allocation4], 128 }
   0x5   :  { %206 = vsyncadd [#allocation4], 4294967168 }
   0x6   :  { %20 = sfence }
   0x7   :  { %v243_v0 = vmov 0.0   ;;  %s245_s20 = smov 0  }
   0x8 LB: > { %s254_s0 = sshll.u32 %s213_s20, 3  ;;  %s29_s20 = sadd.s32 1, %s213_s20   ;;  %s213_s20 = sphi %s245_s20, %s29_s20   ;;  %v209_v0 = vphi %v243_v0, %v354_v0  }
   0x9   : > { %s33_s1 = sld [smem:[#allocation5 + %s254_s0]]  ;;  %s43_s21 = sadd.s32 1, %s254_s0 }
   0xa   : > { %s38_s22 = sld [smem:[#allocation6 + %s254_s0]]  ;;  %s54_s23 = sadd.s32 2, %s254_s0 }
   0xb   : > { %s44_s24 = sld [smem:[#allocation5 + %s43_s21]]  ;;  %s65_s25 = sadd.s32 3, %s254_s0 }
   0xc   : > { %s49_s26 = sld [smem:[#allocation6 + %s43_s21]]  ;;  %s76_s27 = sadd.s32 4, %s254_s0 }
   0xd   : > { %s55_s28 = sld [smem:[#allocation5 + %s54_s23]]  ;;  %s87_s29 = sadd.s32 5, %s254_s0 }
   0xe   : > { %s60_s30 = sld [smem:[#allocation6 + %s54_s23]]  ;;  %s98_s4 = sadd.s32 6, %s254_s0 }
   0xf   : > { %s34_s7 = scalar_lea.vmem %s351_s2, %s33_s1  ;;  %s267_s8 = sld [smem:[#allocation5 + %s65_s25]] }
  0x10   : > { %v35_v1 = vld [vmem:[%s34_s7] sm:$0x1]  ;;  %s39_s11 = scalar_lea.vmem %s351_s2, %s38_s22  ;;  %s272_s12 = sld [smem:[#allocation6 + %s65_s25]] }
  0x11   : > { %v36_v2 = vunpack.c.l.bf16 %v35_v1  ;;  %v40_v3 = vld [vmem:[%s39_s11] sm:$0x1]  ;;  %s45_s15 = scalar_lea.vmem %s351_s2, %s44_s24  ;;  %s277_s16 = sld [smem:[#allocation5 + %s76_s27]] }
  0x12   : > { %v41_v4 = vunpack.c.l.bf16 %v40_v3  ;;  %v46_v5 = vld [vmem:[%s45_s15] sm:$0x1]  ;;  %s50_s19 = scalar_lea.vmem %s351_s2, %s49_s26  ;;  %s282_s1 = sld [smem:[#allocation6 + %s76_s27]] }
  0x13   : > { %37 = vst [vmem:[#allocation2] sm:$0x1] %v36_v2  ;;  %v47_v6 = vunpack.c.l.bf16 %v46_v5  ;;  %v51_v7 = vld [vmem:[%s50_s19] sm:$0x1]  ;;  %s56_s23 = scalar_lea.vmem %s351_s2, %s55_s28  ;;  %s287_s24 = sld [smem:[#allocation5 + %s87_s29]] }
  0x14   : > { %42 = vst [vmem:[#allocation3] sm:$0x1] %v41_v4  ;;  %v52_v8 = vunpack.c.l.bf16 %v51_v7  ;;  %v57_v9 = vld [vmem:[%s56_s23] sm:$0x1]  ;;  %s61_s26 = scalar_lea.vmem %s351_s2, %s60_s30  ;;  %s292_s27 = sld [smem:[#allocation6 + %s87_s29]] }
  0x15   : > { %48 = vst [vmem:[#allocation2 + $0x1] sm:$0x1] %v47_v6  ;;  %v58_v10 = vunpack.c.l.bf16 %v57_v9  ;;  %v62_v11 = vld [vmem:[%s61_s26] sm:$0x1]  ;;  %s67_s28 = scalar_lea.vmem %s351_s2, %s267_s8  ;;  %s300_s9 = sld [smem:[#allocation5 + %s98_s4]] }
  0x16   : > { %53 = vst [vmem:[#allocation3 + $0x1] sm:$0x1] %v52_v8  ;;  %v63_v12 = vunpack.c.l.bf16 %v62_v11  ;;  %v68_v13 = vld [vmem:[%s67_s28] sm:$0x1]  ;;  %s72_s29 = scalar_lea.vmem %s351_s2, %s272_s12  ;;  %s308_s30 = sld [smem:[#allocation6 + %s98_s4]] }
  0x17   : > { %59 = vst [vmem:[#allocation2 + $0x2] sm:$0x1] %v58_v10  ;;  %v69_v14 = vunpack.c.l.bf16 %v68_v13  ;;  %v73_v15 = vld [vmem:[%s72_s29] sm:$0x1]  ;;  %s78_s8 = scalar_lea.vmem %s351_s2, %s277_s16  ;;  %s109_s15 = sadd.s32 7, %s254_s0 }
  0x18   : > { %64 = vst [vmem:[#allocation3 + $0x2] sm:$0x1] %v63_v12  ;;  %v74_v16 = vunpack.c.l.bf16 %v73_v15  ;;  %v79_v17 = vld [vmem:[%s78_s8] sm:$0x1]  ;;  %s83_s12 = scalar_lea.vmem %s351_s2, %s282_s1  ;;  %s110_s19 = sld [smem:[#allocation5 + %s109_s15]] }
  0x19   : > { %70 = vst [vmem:[#allocation2 + $0x3] sm:$0x1] %v69_v14  ;;  %v80_v18 = vunpack.c.l.bf16 %v79_v17  ;;  %v84_v19 = vld [vmem:[%s83_s12] sm:$0x1]  ;;  %s89_s22 = scalar_lea.vmem %s351_s2, %s287_s24  ;;  %s115_s23 = sld [smem:[#allocation6 + %s109_s15]] }
  0x1a   : > { %75 = vst [vmem:[#allocation3 + $0x3] sm:$0x1] %v74_v16  ;;  %v85_v20 = vunpack.c.l.bf16 %v84_v19  ;;  %v90_v21 = vld [vmem:[%s89_s22] sm:$0x1]  ;;  %s94_s25 = scalar_lea.vmem %s351_s2, %s292_s27  ;;  %p26_p0 = scmp.ge.s32.totalorder %s29_s20, 64  }
  0x1b   : > { %81 = vst [vmem:[#allocation2 + $0x4] sm:$0x1] %v80_v18  ;;  %v91_v22 = vunpack.c.l.bf16 %v90_v21  ;;  %v95_v23 = vld [vmem:[%s94_s25] sm:$0x1]  ;;  %s100_s26 = scalar_lea.vmem %s351_s2, %s300_s9 }
  0x1c   : > { %86 = vst [vmem:[#allocation3 + $0x4] sm:$0x1] %v85_v20  ;;  %v96_v24 = vunpack.c.l.bf16 %v95_v23  ;;  %v101_v25 = vld [vmem:[%s100_s26] sm:$0x1]  ;;  %s105_s7 = scalar_lea.vmem %s351_s2, %s308_s30 }
  0x1d   : > { %92 = vst [vmem:[#allocation2 + $0x5] sm:$0x1] %v91_v22  ;;  %v102_v26 = vunpack.c.l.bf16 %v101_v25  ;;  %v106_v27 = vld [vmem:[%s105_s7] sm:$0x1] }
  0x1e   : > { %97 = vst [vmem:[#allocation3 + $0x5] sm:$0x1] %v96_v24  ;;  %v107_v28 = vunpack.c.l.bf16 %v106_v27  ;;  %s111_s10 = scalar_lea.vmem %s351_s2, %s110_s19 }
  0x1f   : > { %103 = vst [vmem:[#allocation2 + $0x6] sm:$0x1] %v102_v26  ;;  %v112_v29 = vld [vmem:[%s111_s10] sm:$0x1]  ;;  %s116_s29 = scalar_lea.vmem %s351_s2, %s115_s23 }
  0x20   : > { %108 = vst [vmem:[#allocation3 + $0x6] sm:$0x1] %v107_v28  ;;  %v113_v30 = vunpack.c.l.bf16 %v112_v29  ;;  %v117_v31 = vld [vmem:[%s116_s29] sm:$0x1] }
  0x21   : > { %v118_v32 = vunpack.c.l.bf16 %v117_v31 }
  0x22   : > { %114 = vst [vmem:[#allocation2 + $0x7] sm:$0x1] %v113_v30 }
  0x23   : > { %119 = vst [vmem:[#allocation3 + $0x7] sm:$0x1] %v118_v32 }
  0x29   : > { %v120_v33 = vld [vmem:[#allocation2] sm:$0xff] }
  0x2a   : > { %v121_v34 = vld [vmem:[#allocation3] sm:$0xff] }
  0x2b   : > { %v122_v35 = vsub.f32 %v120_v33, %v121_v34 }
  0x2d   : > { %v123_v36 = vmul.f32 %v122_v35, %v122_v35  ;;  %28 = sbr.rel (!%p26_p0) target bundleno = 8 (0x8), region = 47 }
  0x2f   : > { %v124_v37 = vadd.f32 %v209_v0, %v123_v36  }
  0x31   : > { %v354_v0 = vmov %v124_v37  ;;  %125 = vst [vmem:[%s352_s3] sm:$0xff] (%p26_p0), %v124_v37 }

// kernel: gnn_forward.5
= control target key start
LH: loop header
LB: loop body
LE: loop exit
PB: predicated region body
PF: predicated region fallthrough
CT: control target
= control target key end

     0   :  { %s696_s1 = inlined_call_operand.vmem [shape: bf16[128,128], index: 1, kind: input, shape index: {}]   ;;  %s697_s3 = inlined_call_operand.vmem [shape: bf16[128,128], index: 3, kind: input, shape index: {}]   ;;  %s698_s2 = inlined_call_operand.vmem [shape: f32[1,128], index: 2, kind: input, shape index: {}]   ;;  %s699_s0 = inlined_call_operand.vmem [shape: bf16[8,128], index: 0, kind: input, shape index: {}]   ;;  %s700_s4 = inlined_call_operand.vmem [shape: f32[1,128], index: 4, kind: input, shape index: {}]   ;;  %s701_s5 = inlined_call_operand.vmem [shape: bf16[128,128], index: 5, kind: input, shape index: {}]   ;;  %s702_s6 = inlined_call_operand.vmem [shape: f32[1,128], index: 6, kind: input, shape index: {}]   ;;  %s703_s7 = inlined_call_operand.vmem [shape: bf16[128,128], index: 7, kind: input, shape index: {}]   ;;  %s704_s8 = inlined_call_operand.vmem [shape: f32[1,128], index: 8, kind: input, shape index: {}]   ;;  %s705_s9 = inlined_call_operand.vmem [shape: f32[8,128], index: 9, kind: output, shape index: {}]  }
   0x1   :  { %v503_v0 = vld [vmem:[%s696_s1 + $0x38] sm:$0xff]  ;;  %v502_v1 = vld [vmem:[%s696_s1 + $0x30] sm:$0xff]  ;;  %v501_v4 = vld [vmem:[%s696_s1 + $0x28] sm:$0xff] }
   0x2   :  { %101 = vmatpush.bf16.msra.mxu0 %v503_v0  ;;  %v511_v2 = vld [vmem:[%s697_s3 + $0x38] sm:$0xff]  ;;  %v510_v3 = vld [vmem:[%s697_s3 + $0x30] sm:$0xff]  ;;  %v509_v5 = vld [vmem:[%s697_s3 + $0x28] sm:$0xff] }
   0x3   :  { %184 = vmatpush.bf16.msra.mxu1 %v511_v2  ;;  %v500_v6 = vld [vmem:[%s696_s1 + $0x20] sm:$0xff]  ;;  %v499_v8 = vld [vmem:[%s696_s1 + $0x18] sm:$0xff]  ;;  %v498_v10 = vld [vmem:[%s696_s1 + $0x10] sm:$0xff] }
   0x4   :  { %v508_v7 = vld [vmem:[%s697_s3 + $0x20] sm:$0xff]  ;;  %v507_v9 = vld [vmem:[%s697_s3 + $0x18] sm:$0xff]  ;;  %v506_v11 = vld [vmem:[%s697_s3 + $0x10] sm:$0xff] }
   0x5   :  { %v497_v12 = vld [vmem:[%s696_s1 + $0x8] sm:$0xff]  ;;  %v496_v13 = vld [vmem:[%s696_s1] sm:$0xff]  ;;  %v519_v17 = vld [vmem:[%s701_s5 + $0x38] sm:$0xff] }
   0x6   :  { %102 = vmatpush.bf16.msra.mxu0 %v502_v1  ;;  %v32_v14 = vld [vmem:[%s699_s0] sm:$0xf]  ;;  %v505_v15 = vld [vmem:[%s697_s3 + $0x8] sm:$0xff]  ;;  %267 = vmatpush.bf16.msra.mxu2 %v519_v17  ;;  %v518_v18 = vld [vmem:[%s701_s5 + $0x30] sm:$0xff] }
   0x7   :  { %185 = vmatpush.bf16.msra.mxu1 %v510_v3  ;;  %v504_v16 = vld [vmem:[%s697_s3] sm:$0xff]  ;;  %v517_v19 = vld [vmem:[%s701_s5 + $0x28] sm:$0xff]  ;;  %v515_v21 = vld [vmem:[%s701_s5 + $0x18] sm:$0xff] }
   0x8   :  { %v516_v20 = vld [vmem:[%s701_s5 + $0x20] sm:$0xff]  ;;  %v514_v22 = vld [vmem:[%s701_s5 + $0x10] sm:$0xff]  ;;  %v513_v29 = vld [vmem:[%s701_s5 + $0x8] sm:$0xff] }
   0x9   :  { %v528_v23 = vld [vmem:[%s698_s2] ss:$0 sm:$0xff]  ;;  %v527_v31 = vld [vmem:[%s703_s7 + $0x38] sm:$0xff]  ;;  %v526_v32 = vld [vmem:[%s703_s7 + $0x30] sm:$0xff] }
   0xa   :  { %103 = vmatpush.bf16.msra.mxu0 %v501_v4  ;;  %268 = vmatpush.bf16.msra.mxu2 %v518_v18  ;;  %v512_v30 = vld [vmem:[%s701_s5] sm:$0xff]  ;;  %v525_v33 = vld [vmem:[%s703_s7 + $0x28] sm:$0xff]  ;;  %v523_v35 = vld [vmem:[%s703_s7 + $0x18] sm:$0xff] }
   0xb   :  { %186 = vmatpush.bf16.msra.mxu1 %v509_v5  ;;  %350 = vmatpush.bf16.msra.mxu3 %v527_v31  ;;  %v524_v34 = vld [vmem:[%s703_s7 + $0x20] sm:$0xff]  ;;  %v522_v36 = vld [vmem:[%s703_s7 + $0x10] sm:$0xff]  ;;  %v521_v43 = vld [vmem:[%s703_s7 + $0x8] sm:$0xff] }
   0xc   :  { %v529_v37 = vld [vmem:[%s700_s4] ss:$0 sm:$0xff] }
   0xd   :  { %v520_v44 = vld [vmem:[%s703_s7] sm:$0xff] }
   0xe   :  { %104 = vmatpush.bf16.msra.mxu0 %v500_v6  ;;  %269 = vmatpush.bf16.msra.mxu2 %v517_v19  ;;  %v530_v45 = vld [vmem:[%s702_s6] ss:$0 sm:$0xff] }
   0xf   :  { %187 = vmatpush.bf16.msra.mxu1 %v508_v7  ;;  %351 = vmatpush.bf16.msra.mxu3 %v526_v32  ;;  %v531_v51 = vld [vmem:[%s704_s8] ss:$0 sm:$0xff] }
  0x12   :  { %105 = vmatpush.bf16.msra.mxu0 %v499_v8  ;;  %270 = vmatpush.bf16.msra.mxu2 %v516_v20 }
  0x13   :  { %188 = vmatpush.bf16.msra.mxu1 %v507_v9  ;;  %352 = vmatpush.bf16.msra.mxu3 %v525_v33 }
  0x16   :  { %106 = vmatpush.bf16.msra.mxu0 %v498_v10  ;;  %271 = vmatpush.bf16.msra.mxu2 %v515_v21 }
  0x17   :  { %189 = vmatpush.bf16.msra.mxu1 %v506_v11  ;;  %353 = vmatpush.bf16.msra.mxu3 %v524_v34 }
  0x1a   :  { %107 = vmatpush.bf16.msra.mxu0 %v497_v12  ;;  %272 = vmatpush.bf16.msra.mxu2 %v514_v22 }
  0x1b   :  { %190 = vmatpush.bf16.msra.mxu1 %v505_v15  ;;  %354 = vmatpush.bf16.msra.mxu3 %v523_v35 }
  0x1e   :  { %108 = vmatpush.bf16.msra.mxu0 %v496_v13  ;;  %273 = vmatpush.bf16.msra.mxu2 %v513_v29 }
  0x1f   :  { %191 = vmatpush.bf16.msra.mxu1 %v504_v16  ;;  %355 = vmatpush.bf16.msra.mxu3 %v522_v36 }
  0x21   :  { %109 = vmatmul.bf16.vlgmr.msra.gmra.mxu0 %v32_v14 }
  0x22   :  { %274 = vmatpush.bf16.msra.mxu2 %v512_v30 }
  0x23   :  { %356 = vmatpush.bf16.msra.mxu3 %v521_v43 }
  0x27   :  { %357 = vmatpush.bf16.msra.mxu3 %v520_v44 }
  0x9e   :  { %v110_v24 = vpop.f32.mrf.mxu0 }
  0x9f   :  { %v111_v25 = vadd.f32 %v528_v23, %v110_v24 }
  0xa1   :  { %v114_v26 = vmax.f32 %v111_v25, 0.0 }
  0xa3   :  { %v115_v27 = vpack.c.bf16 %v114_v26, %v114_v26 }
  0xa5   :  { %192 = vmatmul.bf16.vlgmr.msra.gmra.mxu1 %v115_v27 }
  0xa6   :  { %v112_v28 = vpop.f32.mrf.mxu0 }
 0x122   :  { %v193_v38 = vpop.f32.mrf.mxu1 }
 0x123   :  { %v194_v39 = vadd.f32 %v529_v37, %v193_v38 }
 0x125   :  { %v197_v40 = vmax.f32 %v194_v39, 0.0 }
 0x127   :  { %v198_v41 = vpack.c.bf16 %v197_v40, %v197_v40 }
 0x129   :  { %275 = vmatmul.bf16.vlgmr.msra.gmra.mxu2 %v198_v41 }
 0x12a   :  { %v195_v42 = vpop.f32.mrf.mxu1 }
 0x1ac   :  { %v276_v46 = vpop.f32.mrf.mxu2 }
 0x1ad   :  { %v277_v47 = vadd.f32 %v530_v45, %v276_v46 }
 0x1af   :  { %v280_v48 = vmax.f32 %v277_v47, 0.0 }
 0x1b1   :  { %v281_v49 = vpack.c.bf16 %v280_v48, %v280_v48 }
 0x1b3   :  { %358 = vmatmul.bf16.vlgmr.msra.gmra.mxu3 %v281_v49 }
 0x1b4   :  { %v278_v50 = vpop.f32.mrf.mxu2 }
 0x236   :  { %v359_v52 = vpop.f32.mrf.mxu3 }
 0x237   :  { %v360_v53 = vadd.f32 %v531_v51, %v359_v52 }
 0x239   :  { %363 = vst [vmem:[%s705_s9] sm:$0xff] %v360_v53 }
 0x23e   :  { %v361_v54 = vpop.f32.mrf.mxu3 }

// kernel: gnn_forward.3
= control target key start
LH: loop header
LB: loop body
LE: loop exit
PB: predicated region body
PF: predicated region fallthrough
CT: control target
= control target key end

     0   :  { %vm341_vm0 = vcmask 1043456   ;;  %vm244_vm1 = vcmask 64512   ;;  %s1413_s1 = inlined_call_operand.vmem [shape: bf16[8,128], index: 1, kind: input, shape index: {}]   ;;  %s1414_s0 = inlined_call_operand.vmem [shape: bf16[512,8], index: 0, kind: input, shape index: {}]   ;;  %s1415_s2 = inlined_call_operand.vmem [shape: f32[1,128], index: 2, kind: input, shape index: {}]   ;;  %s1416_s3 = inlined_call_operand.vmem [shape: bf16[512,128], index: 3, kind: output, shape index: {}]  }
   0x1   :  { %v79_v0 = vld [vmem:[%s1413_s1] sm:$0xf]  ;;  %v871_v6 = vld [vmem:[%s1414_s0 + $0x8] sm:$0xff]  ;;  %v872_v10 = vld [vmem:[%s1414_s0 + $0x10] sm:$0xff] }
   0x2   :  { %v343_v1 = vsel %vm341_vm0, %v79_v0, 0  ;;  %v870_v2 = vld [vmem:[%s1414_s0] sm:$0xff]  ;;  %v879_v7 = vld [vmem:[%s1414_s0 + $0x48] sm:$0xff]  ;;  %v880_v11 = vld [vmem:[%s1414_s0 + $0x50] sm:$0xff] }
   0x3   :  { %v878_v3 = vld [vmem:[%s1414_s0 + $0x40] sm:$0xff]  ;;  %352 = vmatpush.bf16.msra.mxu0 %v343_v1  ;;  %1093 = vmatpush.bf16.msra.mxu1 %v343_v1  ;;  %v887_v8 = vld [vmem:[%s1414_s0 + $0x88] sm:$0xff]  ;;  %v888_v12 = vld [vmem:[%s1414_s0 + $0x90] sm:$0xff] }
   0x4   :  { %v886_v4 = vld [vmem:[%s1414_s0 + $0x80] sm:$0xff]  ;;  %1094 = vmatpush.bf16.msra.mxu2 %v343_v1  ;;  %1095 = vmatpush.bf16.msra.mxu3 %v343_v1  ;;  %v895_v9 = vld [vmem:[%s1414_s0 + $0xc8] sm:$0xff]  ;;  %v896_v13 = vld [vmem:[%s1414_s0 + $0xd0] sm:$0xff] }
   0x5   :  { %v894_v5 = vld [vmem:[%s1414_s0 + $0xc0] sm:$0xff]  ;;  %v873_v14 = vld [vmem:[%s1414_s0 + $0x18] sm:$0xff]  ;;  %v875_v22 = vld [vmem:[%s1414_s0 + $0x28] sm:$0xff] }
   0x6   :  { %838 = vmatmul.msk.bf16.vlgmr.msra.gmra.mxu0 %vm244_vm1, %v870_v2  ;;  %846 = vmatmul.msk.bf16.vlgmr.msra.gmra.mxu1 %vm244_vm1, %v878_v3  ;;  %v881_v15 = vld [vmem:[%s1414_s0 + $0x58] sm:$0xff]  ;;  %v874_v18 = vld [vmem:[%s1414_s0 + $0x20] sm:$0xff]  ;;  %v883_v23 = vld [vmem:[%s1414_s0 + $0x68] sm:$0xff] }
   0x7   :  { %854 = vmatmul.msk.bf16.vlgmr.msra.gmra.mxu2 %vm244_vm1, %v886_v4  ;;  %862 = vmatmul.msk.bf16.vlgmr.msra.gmra.mxu3 %vm244_vm1, %v894_v5  ;;  %v889_v16 = vld [vmem:[%s1414_s0 + $0x98] sm:$0xff]  ;;  %v882_v19 = vld [vmem:[%s1414_s0 + $0x60] sm:$0xff]  ;;  %v891_v24 = vld [vmem:[%s1414_s0 + $0xa8] sm:$0xff] }
   0x8   :  { %v897_v17 = vld [vmem:[%s1414_s0 + $0xd8] sm:$0xff]  ;;  %v890_v20 = vld [vmem:[%s1414_s0 + $0xa0] sm:$0xff]  ;;  %v899_v25 = vld [vmem:[%s1414_s0 + $0xe8] sm:$0xff] }
   0x9   :  { %v898_v21 = vld [vmem:[%s1414_s0 + $0xe0] sm:$0xff]  ;;  %v876_v26 = vld [vmem:[%s1414_s0 + $0x30] sm:$0xff]  ;;  %v877_v30 = vld [vmem:[%s1414_s0 + $0x38] sm:$0xff] }
   0xa   :  { %v884_v27 = vld [vmem:[%s1414_s0 + $0x70] sm:$0xff]  ;;  %v885_v31 = vld [vmem:[%s1414_s0 + $0x78] sm:$0xff]  ;;  %v1251_v36 = vld [vmem:[%s1415_s2] ss:$0 sm:$0xff] }
   0xb   :  { %v892_v28 = vld [vmem:[%s1414_s0 + $0xb0] sm:$0xff]  ;;  %v893_v32 = vld [vmem:[%s1414_s0 + $0xb8] sm:$0xff] }
   0xc   :  { %v900_v29 = vld [vmem:[%s1414_s0 + $0xf0] sm:$0xff]  ;;  %v901_v33 = vld [vmem:[%s1414_s0 + $0xf8] sm:$0xff] }
  0x16   :  { %839 = vmatmul.msk.bf16.gmra.mxu0 %vm244_vm1, %v871_v6  ;;  %847 = vmatmul.msk.bf16.gmra.mxu1 %vm244_vm1, %v879_v7 }
  0x17   :  { %855 = vmatmul.msk.bf16.gmra.mxu2 %vm244_vm1, %v887_v8  ;;  %863 = vmatmul.msk.bf16.gmra.mxu3 %vm244_vm1, %v895_v9 }
  0x26   :  { %840 = vmatmul.msk.bf16.gmra.mxu0 %vm244_vm1, %v872_v10  ;;  %848 = vmatmul.msk.bf16.gmra.mxu1 %vm244_vm1, %v880_v11 }
  0x27   :  { %856 = vmatmul.msk.bf16.gmra.mxu2 %vm244_vm1, %v888_v12  ;;  %864 = vmatmul.msk.bf16.gmra.mxu3 %vm244_vm1, %v896_v13 }
  0x36   :  { %841 = vmatmul.msk.bf16.gmra.mxu0 %vm244_vm1, %v873_v14  ;;  %849 = vmatmul.msk.bf16.gmra.mxu1 %vm244_vm1, %v881_v15 }
  0x37   :  { %857 = vmatmul.msk.bf16.gmra.mxu2 %vm244_vm1, %v889_v16  ;;  %865 = vmatmul.msk.bf16.gmra.mxu3 %vm244_vm1, %v897_v17 }
  0x46   :  { %842 = vmatmul.msk.bf16.gmra.mxu0 %vm244_vm1, %v874_v18  ;;  %850 = vmatmul.msk.bf16.gmra.mxu1 %vm244_vm1, %v882_v19 }
  0x47   :  { %858 = vmatmul.msk.bf16.gmra.mxu2 %vm244_vm1, %v890_v20  ;;  %866 = vmatmul.msk.bf16.gmra.mxu3 %vm244_vm1, %v898_v21 }
  0x56   :  { %843 = vmatmul.msk.bf16.gmra.mxu0 %vm244_vm1, %v875_v22  ;;  %851 = vmatmul.msk.bf16.gmra.mxu1 %vm244_vm1, %v883_v23 }
  0x57   :  { %859 = vmatmul.msk.bf16.gmra.mxu2 %vm244_vm1, %v891_v24  ;;  %867 = vmatmul.msk.bf16.gmra.mxu3 %vm244_vm1, %v899_v25 }
  0x66   :  { %844 = vmatmul.msk.bf16.gmra.mxu0 %vm244_vm1, %v876_v26  ;;  %852 = vmatmul.msk.bf16.gmra.mxu1 %vm244_vm1, %v884_v27 }
  0x67   :  { %860 = vmatmul.msk.bf16.gmra.mxu2 %vm244_vm1, %v892_v28  ;;  %868 = vmatmul.msk.bf16.gmra.mxu3 %vm244_vm1, %v900_v29 }
  0x76   :  { %845 = vmatmul.msk.bf16.gmra.mxu0 %vm244_vm1, %v877_v30  ;;  %853 = vmatmul.msk.bf16.gmra.mxu1 %vm244_vm1, %v885_v31 }
  0x77   :  { %861 = vmatmul.msk.bf16.gmra.mxu2 %vm244_vm1, %v893_v32  ;;  %869 = vmatmul.msk.bf16.gmra.mxu3 %vm244_vm1, %v901_v33 }
  0x83   :  { %v354_v34 = vpop.f32.mrf.mxu0  ;;  %v394_v35 = vpop.f32.mrf.mxu1 }
  0x84   :  { %v355_v37 = vadd.f32 %v1251_v36, %v354_v34  ;;  %v395_v38 = vadd.f32 %v1251_v36, %v394_v35 }
  0x86   :  { %v514_v45 = vmax.f32 %v355_v37, 0.0  ;;  %v530_v46 = vmax.f32 %v395_v38, 0.0 }
  0x8a   :  { %v434_v39 = vpop.f32.mrf.mxu2  ;;  %v474_v40 = vpop.f32.mrf.mxu3 }
  0x8b   :  { %v356_v41 = vpop.f32.mrf.mxu0  ;;  %v396_v42 = vpop.f32.mrf.mxu1  ;;  %v435_v51 = vadd.f32 %v1251_v36, %v434_v39  ;;  %v475_v52 = vadd.f32 %v1251_v36, %v474_v40 }
  0x8c   :  { %v357_v43 = vadd.f32 %v1251_v36, %v356_v41  ;;  %v397_v44 = vadd.f32 %v1251_v36, %v396_v42 }
  0x8d   :  { %v546_v59 = vmax.f32 %v435_v51, 0.0  ;;  %v562_v60 = vmax.f32 %v475_v52, 0.0 }
  0x8e   :  { %v515_v47 = vmax.f32 %v357_v43, 0.0  ;;  %v531_v48 = vmax.f32 %v397_v44, 0.0 }
  0x90   :  { %v905_v49 = vpack.c.bf16 %v515_v47, %v514_v45  ;;  %v945_v50 = vpack.c.bf16 %v531_v48, %v530_v46 }
  0x92   :  { %906 = vst [vmem:[%s1416_s3] sm:$0xff] %v905_v49   ;;  %v436_v53 = vpop.f32.mrf.mxu2  ;;  %v476_v54 = vpop.f32.mrf.mxu3 }
  0x93   :  { %1069 = vst [vmem:[%s1416_s3 + $0x40] sm:$0xff] %v945_v50   ;;  %v437_v55 = vadd.f32 %v1251_v36, %v436_v53  ;;  %v477_v56 = vadd.f32 %v1251_v36, %v476_v54  ;;  %v359_v57 = vpop.f32.mrf.mxu0  ;;  %v399_v58 = vpop.f32.mrf.mxu1 }
  0x94   :  { %v360_v1 = vadd.f32 %v1251_v36, %v359_v57  ;;  %v400_v2 = vadd.f32 %v1251_v36, %v399_v58 }
  0x95   :  { %v547_v61 = vmax.f32 %v437_v55, 0.0  ;;  %v563_v62 = vmax.f32 %v477_v56, 0.0 }
  0x96   :  { %v516_v9 = vmax.f32 %v360_v1, 0.0  ;;  %v532_v10 = vmax.f32 %v400_v2, 0.0 }
  0x97   :  { %v985_v63 = vpack.c.bf16 %v547_v61, %v546_v59  ;;  %v1025_v0 = vpack.c.bf16 %v563_v62, %v562_v60 }
  0x99   :  { %1077 = vst [vmem:[%s1416_s3 + $0x80] sm:$0xff] %v985_v63  }
  0x9a   :  { %1085 = vst [vmem:[%s1416_s3 + $0xc0] sm:$0xff] %v1025_v0   ;;  %v439_v3 = vpop.f32.mrf.mxu2  ;;  %v479_v4 = vpop.f32.mrf.mxu3 }
  0x9b   :  { %v361_v5 = vpop.f32.mrf.mxu0  ;;  %v401_v6 = vpop.f32.mrf.mxu1  ;;  %v440_v15 = vadd.f32 %v1251_v36, %v439_v3  ;;  %v480_v16 = vadd.f32 %v1251_v36, %v479_v4 }
  0x9c   :  { %v362_v7 = vadd.f32 %v1251_v36, %v361_v5  ;;  %v402_v8 = vadd.f32 %v1251_v36, %v401_v6 }
  0x9d   :  { %v548_v23 = vmax.f32 %v440_v15, 0.0  ;;  %v564_v24 = vmax.f32 %v480_v16, 0.0 }
  0x9e   :  { %v517_v11 = vmax.f32 %v362_v7, 0.0  ;;  %v533_v12 = vmax.f32 %v402_v8, 0.0 }
  0xa0   :  { %v910_v13 = vpack.c.bf16 %v517_v11, %v516_v9  ;;  %v950_v14 = vpack.c.bf16 %v533_v12, %v532_v10 }
  0xa2   :  { %1062 = vst [vmem:[%s1416_s3 + $0x8] sm:$0xff] %v910_v13   ;;  %v441_v17 = vpop.f32.mrf.mxu2  ;;  %v481_v18 = vpop.f32.mrf.mxu3 }
  0xa3   :  { %1070 = vst [vmem:[%s1416_s3 + $0x48] sm:$0xff] %v950_v14   ;;  %v442_v19 = vadd.f32 %v1251_v36, %v441_v17  ;;  %v482_v20 = vadd.f32 %v1251_v36, %v481_v18  ;;  %v364_v21 = vpop.f32.mrf.mxu0  ;;  %v404_v22 = vpop.f32.mrf.mxu1 }
  0xa4   :  { %v365_v29 = vadd.f32 %v1251_v36, %v364_v21  ;;  %v405_v30 = vadd.f32 %v1251_v36, %v404_v22 }
  0xa5   :  { %v549_v25 = vmax.f32 %v442_v19, 0.0  ;;  %v565_v26 = vmax.f32 %v482_v20, 0.0 }
  0xa6   :  { %v518_v38 = vmax.f32 %v365_v29, 0.0  ;;  %v534_v39 = vmax.f32 %v405_v30, 0.0 }
  0xa7   :  { %v990_v27 = vpack.c.bf16 %v549_v25, %v548_v23  ;;  %v1030_v28 = vpack.c.bf16 %v565_v26, %v564_v24 }
  0xa9   :  { %1078 = vst [vmem:[%s1416_s3 + $0x88] sm:$0xff] %v990_v27  }
  0xaa   :  { %1086 = vst [vmem:[%s1416_s3 + $0xc8] sm:$0xff] %v1030_v28   ;;  %v444_v31 = vpop.f32.mrf.mxu2  ;;  %v484_v32 = vpop.f32.mrf.mxu3 }
  0xab   :  { %v366_v33 = vpop.f32.mrf.mxu0  ;;  %v406_v34 = vpop.f32.mrf.mxu1  ;;  %v445_v44 = vadd.f32 %v1251_v36, %v444_v31  ;;  %v485_v45 = vadd.f32 %v1251_v36, %v484_v32 }
  0xac   :  { %v367_v35 = vadd.f32 %v1251_v36, %v366_v33  ;;  %v407_v37 = vadd.f32 %v1251_v36, %v406_v34 }
  0xad   :  { %v550_v52 = vmax.f32 %v445_v44, 0.0  ;;  %v566_v53 = vmax.f32 %v485_v45, 0.0 }
  0xae   :  { %v519_v40 = vmax.f32 %v367_v35, 0.0  ;;  %v535_v41 = vmax.f32 %v407_v37, 0.0 }
  0xb0   :  { %v915_v42 = vpack.c.bf16 %v519_v40, %v518_v38  ;;  %v955_v43 = vpack.c.bf16 %v535_v41, %v534_v39 }
  0xb2   :  { %1063 = vst [vmem:[%s1416_s3 + $0x10] sm:$0xff] %v915_v42   ;;  %v446_v46 = vpop.f32.mrf.mxu2  ;;  %v486_v47 = vpop.f32.mrf.mxu3 }
  0xb3   :  { %1071 = vst [vmem:[%s1416_s3 + $0x50] sm:$0xff] %v955_v43   ;;  %v447_v48 = vadd.f32 %v1251_v36, %v446_v46  ;;  %v487_v49 = vadd.f32 %v1251_v36, %v486_v47  ;;  %v369_v50 = vpop.f32.mrf.mxu0  ;;  %v409_v51 = vpop.f32.mrf.mxu1 }
  0xb4   :  { %v370_v58 = vadd.f32 %v1251_v36, %v369_v50  ;;  %v410_v59 = vadd.f32 %v1251_v36, %v409_v51 }
  0xb5   :  { %v551_v54 = vmax.f32 %v447_v48, 0.0  ;;  %v567_v55 = vmax.f32 %v487_v49, 0.0 }
  0xb6   :  { %v520_v2 = vmax.f32 %v370_v58, 0.0  ;;  %v536_v3 = vmax.f32 %v410_v59, 0.0 }
  0xb7   :  { %v995_v56 = vpack.c.bf16 %v551_v54, %v550_v52  ;;  %v1035_v57 = vpack.c.bf16 %v567_v55, %v566_v53 }
  0xb9   :  { %1079 = vst [vmem:[%s1416_s3 + $0x90] sm:$0xff] %v995_v56  }
  0xba   :  { %1087 = vst [vmem:[%s1416_s3 + $0xd0] sm:$0xff] %v1035_v57   ;;  %v449_v60 = vpop.f32.mrf.mxu2  ;;  %v489_v61 = vpop.f32.mrf.mxu3 }
  0xbb   :  { %v371_v62 = vpop.f32.mrf.mxu0  ;;  %v411_v63 = vpop.f32.mrf.mxu1  ;;  %v450_v8 = vadd.f32 %v1251_v36, %v449_v60  ;;  %v490_v9 = vadd.f32 %v1251_v36, %v489_v61 }
  0xbc   :  { %v372_v0 = vadd.f32 %v1251_v36, %v371_v62  ;;  %v412_v1 = vadd.f32 %v1251_v36, %v411_v63 }
  0xbd   :  { %v552_v16 = vmax.f32 %v450_v8, 0.0  ;;  %v568_v17 = vmax.f32 %v490_v9, 0.0 }
  0xbe   :  { %v521_v4 = vmax.f32 %v372_v0, 0.0  ;;  %v537_v5 = vmax.f32 %v412_v1, 0.0 }
  0xc0   :  { %v920_v6 = vpack.c.bf16 %v521_v4, %v520_v2  ;;  %v960_v7 = vpack.c.bf16 %v537_v5, %v536_v3 }
  0xc2   :  { %1064 = vst [vmem:[%s1416_s3 + $0x18] sm:$0xff] %v920_v6   ;;  %v451_v10 = vpop.f32.mrf.mxu2  ;;  %v491_v11 = vpop.f32.mrf.mxu3 }
  0xc3   :  { %1072 = vst [vmem:[%s1416_s3 + $0x58] sm:$0xff] %v960_v7   ;;  %v452_v12 = vadd.f32 %v1251_v36, %v451_v10  ;;  %v492_v13 = vadd.f32 %v1251_v36, %v491_v11  ;;  %v374_v14 = vpop.f32.mrf.mxu0  ;;  %v414_v15 = vpop.f32.mrf.mxu1 }
  0xc4   :  { %v375_v22 = vadd.f32 %v1251_v36, %v374_v14  ;;  %v415_v23 = vadd.f32 %v1251_v36, %v414_v15 }
  0xc5   :  { %v553_v18 = vmax.f32 %v452_v12, 0.0  ;;  %v569_v19 = vmax.f32 %v492_v13, 0.0 }
  0xc6   :  { %v522_v30 = vmax.f32 %v375_v22, 0.0  ;;  %v538_v31 = vmax.f32 %v415_v23, 0.0 }
  0xc7   :  { %v1000_v20 = vpack.c.bf16 %v553_v18, %v552_v16  ;;  %v1040_v21 = vpack.c.bf16 %v569_v19, %v568_v17 }
  0xc9   :  { %1080 = vst [vmem:[%s1416_s3 + $0x98] sm:$0xff] %v1000_v20  }
  0xca   :  { %1088 = vst [vmem:[%s1416_s3 + $0xd8] sm:$0xff] %v1040_v21   ;;  %v454_v24 = vpop.f32.mrf.mxu2  ;;  %v494_v25 = vpop.f32.mrf.mxu3 }
  0xcb   :  { %v376_v26 = vpop.f32.mrf.mxu0  ;;  %v416_v27 = vpop.f32.mrf.mxu1  ;;  %v455_v37 = vadd.f32 %v1251_v36, %v454_v24  ;;  %v495_v38 = vadd.f32 %v1251_v36, %v494_v25 }
  0xcc   :  { %v377_v28 = vadd.f32 %v1251_v36, %v376_v26  ;;  %v417_v29 = vadd.f32 %v1251_v36, %v416_v27 }
  0xcd   :  { %v554_v45 = vmax.f32 %v455_v37, 0.0  ;;  %v570_v46 = vmax.f32 %v495_v38, 0.0 }
  0xce   :  { %v523_v32 = vmax.f32 %v377_v28, 0.0  ;;  %v539_v33 = vmax.f32 %v417_v29, 0.0 }
  0xd0   :  { %v925_v34 = vpack.c.bf16 %v523_v32, %v522_v30  ;;  %v965_v35 = vpack.c.bf16 %v539_v33, %v538_v31 }
  0xd2   :  { %1065 = vst [vmem:[%s1416_s3 + $0x20] sm:$0xff] %v925_v34   ;;  %v456_v39 = vpop.f32.mrf.mxu2  ;;  %v496_v40 = vpop.f32.mrf.mxu3 }
  0xd3   :  { %1073 = vst [vmem:[%s1416_s3 + $0x60] sm:$0xff] %v965_v35   ;;  %v457_v41 = vadd.f32 %v1251_v36, %v456_v39  ;;  %v497_v42 = vadd.f32 %v1251_v36, %v496_v40  ;;  %v379_v43 = vpop.f32.mrf.mxu0  ;;  %v419_v44 = vpop.f32.mrf.mxu1 }
  0xd4   :  { %v380_v51 = vadd.f32 %v1251_v36, %v379_v43  ;;  %v420_v52 = vadd.f32 %v1251_v36, %v419_v44 }
  0xd5   :  { %v555_v47 = vmax.f32 %v457_v41, 0.0  ;;  %v571_v48 = vmax.f32 %v497_v42, 0.0 }
  0xd6   :  { %v524_v59 = vmax.f32 %v380_v51, 0.0  ;;  %v540_v60 = vmax.f32 %v420_v52, 0.0 }
  0xd7   :  { %v1005_v49 = vpack.c.bf16 %v555_v47, %v554_v45  ;;  %v1045_v50 = vpack.c.bf16 %v571_v48, %v570_v46 }
  0xd9   :  { %1081 = vst [vmem:[%s1416_s3 + $0xa0] sm:$0xff] %v1005_v49  }
  0xda   :  { %1089 = vst [vmem:[%s1416_s3 + $0xe0] sm:$0xff] %v1045_v50   ;;  %v459_v53 = vpop.f32.mrf.mxu2  ;;  %v499_v54 = vpop.f32.mrf.mxu3 }
  0xdb   :  { %v381_v55 = vpop.f32.mrf.mxu0  ;;  %v421_v56 = vpop.f32.mrf.mxu1  ;;  %v460_v1 = vadd.f32 %v1251_v36, %v459_v53  ;;  %v500_v2 = vadd.f32 %v1251_v36, %v499_v54 }
  0xdc   :  { %v382_v57 = vadd.f32 %v1251_v36, %v381_v55  ;;  %v422_v58 = vadd.f32 %v1251_v36, %v421_v56 }
  0xdd   :  { %v556_v9 = vmax.f32 %v460_v1, 0.0  ;;  %v572_v10 = vmax.f32 %v500_v2, 0.0 }
  0xde   :  { %v525_v61 = vmax.f32 %v382_v57, 0.0  ;;  %v541_v62 = vmax.f32 %v422_v58, 0.0 }
  0xe0   :  { %v930_v63 = vpack.c.bf16 %v525_v61, %v524_v59  ;;  %v970_v0 = vpack.c.bf16 %v541_v62, %v540_v60 }
  0xe2   :  { %1066 = vst [vmem:[%s1416_s3 + $0x28] sm:$0xff] %v930_v63   ;;  %v461_v3 = vpop.f32.mrf.mxu2  ;;  %v501_v4 = vpop.f32.mrf.mxu3 }
  0xe3   :  { %1074 = vst [vmem:[%s1416_s3 + $0x68] sm:$0xff] %v970_v0   ;;  %v462_v5 = vadd.f32 %v1251_v36, %v461_v3  ;;  %v502_v6 = vadd.f32 %v1251_v36, %v501_v4  ;;  %v384_v7 = vpop.f32.mrf.mxu0  ;;  %v424_v8 = vpop.f32.mrf.mxu1 }
  0xe4   :  { %v385_v15 = vadd.f32 %v1251_v36, %v384_v7  ;;  %v425_v16 = vadd.f32 %v1251_v36, %v424_v8 }
  0xe5   :  { %v557_v11 = vmax.f32 %v462_v5, 0.0  ;;  %v573_v12 = vmax.f32 %v502_v6, 0.0 }
  0xe6   :  { %v526_v23 = vmax.f32 %v385_v15, 0.0  ;;  %v542_v24 = vmax.f32 %v425_v16, 0.0 }
  0xe7   :  { %v1010_v13 = vpack.c.bf16 %v557_v11, %v556_v9  ;;  %v1050_v14 = vpack.c.bf16 %v573_v12, %v572_v10 }
  0xe9   :  { %1082 = vst [vmem:[%s1416_s3 + $0xa8] sm:$0xff] %v1010_v13  }
  0xea   :  { %1090 = vst [vmem:[%s1416_s3 + $0xe8] sm:$0xff] %v1050_v14   ;;  %v464_v17 = vpop.f32.mrf.mxu2  ;;  %v504_v18 = vpop.f32.mrf.mxu3 }
  0xeb   :  { %v386_v19 = vpop.f32.mrf.mxu0  ;;  %v426_v20 = vpop.f32.mrf.mxu1  ;;  %v465_v29 = vadd.f32 %v1251_v36, %v464_v17  ;;  %v505_v30 = vadd.f32 %v1251_v36, %v504_v18 }
  0xec   :  { %v387_v21 = vadd.f32 %v1251_v36, %v386_v19  ;;  %v427_v22 = vadd.f32 %v1251_v36, %v426_v20 }
  0xed   :  { %v558_v38 = vmax.f32 %v465_v29, 0.0  ;;  %v574_v39 = vmax.f32 %v505_v30, 0.0 }
  0xee   :  { %v527_v25 = vmax.f32 %v387_v21, 0.0  ;;  %v543_v26 = vmax.f32 %v427_v22, 0.0 }
  0xf0   :  { %v935_v27 = vpack.c.bf16 %v527_v25, %v526_v23  ;;  %v975_v28 = vpack.c.bf16 %v543_v26, %v542_v24 }
  0xf2   :  { %1067 = vst [vmem:[%s1416_s3 + $0x30] sm:$0xff] %v935_v27   ;;  %v466_v31 = vpop.f32.mrf.mxu2  ;;  %v506_v32 = vpop.f32.mrf.mxu3 }
  0xf3   :  { %1075 = vst [vmem:[%s1416_s3 + $0x70] sm:$0xff] %v975_v28   ;;  %v467_v33 = vadd.f32 %v1251_v36, %v466_v31  ;;  %v507_v34 = vadd.f32 %v1251_v36, %v506_v32  ;;  %v389_v35 = vpop.f32.mrf.mxu0  ;;  %v429_v37 = vpop.f32.mrf.mxu1 }
  0xf4   :  { %v390_v44 = vadd.f32 %v1251_v36, %v389_v35  ;;  %v430_v45 = vadd.f32 %v1251_v36, %v429_v37 }
  0xf5   :  { %v559_v40 = vmax.f32 %v467_v33, 0.0  ;;  %v575_v41 = vmax.f32 %v507_v34, 0.0 }
  0xf6   :  { %v528_v52 = vmax.f32 %v390_v44, 0.0  ;;  %v544_v53 = vmax.f32 %v430_v45, 0.0 }
  0xf7   :  { %v1015_v42 = vpack.c.bf16 %v559_v40, %v558_v38  ;;  %v1055_v43 = vpack.c.bf16 %v575_v41, %v574_v39 }
  0xf9   :  { %1083 = vst [vmem:[%s1416_s3 + $0xb0] sm:$0xff] %v1015_v42  }
  0xfa   :  { %1091 = vst [vmem:[%s1416_s3 + $0xf0] sm:$0xff] %v1055_v43   ;;  %v469_v46 = vpop.f32.mrf.mxu2  ;;  %v509_v47 = vpop.f32.mrf.mxu3 }
  0xfb   :  { %v391_v48 = vpop.f32.mrf.mxu0  ;;  %v431_v49 = vpop.f32.mrf.mxu1  ;;  %v470_v58 = vadd.f32 %v1251_v36, %v469_v46  ;;  %v510_v59 = vadd.f32 %v1251_v36, %v509_v47 }
  0xfc   :  { %v392_v50 = vadd.f32 %v1251_v36, %v391_v48  ;;  %v432_v51 = vadd.f32 %v1251_v36, %v431_v49 }
  0xfd   :  { %v560_v0 = vmax.f32 %v470_v58, 0.0  ;;  %v576_v1 = vmax.f32 %v510_v59, 0.0 }
  0xfe   :  { %v529_v54 = vmax.f32 %v392_v50, 0.0  ;;  %v545_v55 = vmax.f32 %v432_v51, 0.0 }
 0x100   :  { %v940_v56 = vpack.c.bf16 %v529_v54, %v528_v52  ;;  %v980_v57 = vpack.c.bf16 %v545_v55, %v544_v53 }
 0x102   :  { %1068 = vst [vmem:[%s1416_s3 + $0x38] sm:$0xff] %v940_v56   ;;  %v471_v60 = vpop.f32.mrf.mxu2  ;;  %v511_v61 = vpop.f32.mrf.mxu3 }
 0x103   :  { %1076 = vst [vmem:[%s1416_s3 + $0x78] sm:$0xff] %v980_v57   ;;  %v472_v62 = vadd.f32 %v1251_v36, %v471_v60  ;;  %v512_v63 = vadd.f32 %v1251_v36, %v511_v61 }
 0x105   :  { %v561_v2 = vmax.f32 %v472_v62, 0.0  ;;  %v577_v3 = vmax.f32 %v512_v63, 0.0 }
 0x107   :  { %v1020_v4 = vpack.c.bf16 %v561_v2, %v560_v0  ;;  %v1060_v5 = vpack.c.bf16 %v577_v3, %v576_v1 }
 0x109   :  { %1084 = vst [vmem:[%s1416_s3 + $0xb8] sm:$0xff] %v1020_v4  }
 0x10a   :  { %1092 = vst [vmem:[%s1416_s3 + $0xf8] sm:$0xff] %v1060_v5  }

</bundles_post_ra>
